<compile_context>
chip_gen: v5e
topology: v5e:2x2
jax: 0.10.0
libtpu: 0.0.40
codegen_flags: <defaults>
</compile_context>

<pallas_src>
import functools

import jax
import jax.numpy as jnp
from jax.experimental import pallas as pl
from jax.experimental.pallas import tpu as pltpu


# ----------------------------------------------------------------------------
# Pallas kernel: in-VMEM im2col + one K=9*Cin MXU contraction per grid step
# ----------------------------------------------------------------------------

def _downsample_kernel(x_ref, w_ref, b_ref, o_ref, a_ref, *, ho, wo, cin, bb):
    """One grid step = `bb` batch elements.

    x_ref: (bb, ho+1, 2*(wo+1), 2*cin) bf16 — padded NHWC image with adjacent W
           pixels paired into the lane dim.  Element [b, hh, q*(wo+1)+ww, kw*cin+c]
           is padded-input pixel (2*hh + q, 2*ww + kw), channel c.
    w_ref: (9*cin, Np) bf16 — im2col weights; K order is the same as the A build
           below: 3 blocks of (kh, kw in {0,1}, c) then 3 blocks of (kh, kw=2, c).
    b_ref: (1, Np) f32 bias.
    o_ref: (bb, ho, wo, Np) f32 lane-dense output block (Np % 128 == 0).
    a_ref: (bb*ho*wo, 9*cin) bf16 VMEM scratch — the im2col A matrix.
    """
    c = cin
    m = bb * ho * wo
    wpair = wo + 1                      # stride between the q=0 / q=1 halves of dim 2

    # Build A: per kh, one lane-aligned 2c-wide block (taps kw=0,1 together — they are
    # adjacent W pixels, i.e. the two lane halves) and one c-wide block (tap kw=2).
    # All indexing is static and unit-stride; the stride-2 conv structure was folded
    # into the (hh, q) row split and the W lane pairing by the host-side free reshape.
    for kh, (hh0, qh) in enumerate(((0, 0), (0, 1), (1, 0))):       # kh = 2*hh0 + qh
        pair = x_ref[:, hh0:hh0 + ho, qh * wpair: qh * wpair + wo, :]          # (bb,ho,wo,2c)
        a_ref[:, 2 * c * kh: 2 * c * (kh + 1)] = pair.reshape(m, 2 * c)
        last = x_ref[:, hh0:hh0 + ho, qh * wpair + 1: qh * wpair + 1 + wo, 0:c]  # (bb,ho,wo,c)
        a_ref[:, 6 * c + c * kh: 6 * c + c * (kh + 1)] = last.reshape(m, c)

    # One dense MXU contraction, K = 9*cin, f32 accumulation; bias fused into the
    # single epilogue add (no separate zero-init pass).
    acc = jnp.dot(a_ref[...], w_ref[...], preferred_element_type=jnp.float32)
    o_ref[...] = (acc + b_ref[...]).reshape(o_ref.shape)


# ----------------------------------------------------------------------------
# Host wrapper
# ----------------------------------------------------------------------------

def _pick_batch_block(batch, rows_per_image):
    """Largest divisor of `batch` giving >=256 matmul rows per step when possible,
    while keeping >=2 grid steps so both v7x TensorCores stay busy."""
    target = max(1, -(-256 // rows_per_image))
    best = 1
    for d in range(1, batch + 1):
        if batch % d == 0 and d <= target and (batch // d >= 2 or batch == 1):
            best = d
    return best


def downsample(x_nchw, w_oihw, bias):
    """F.pad(x, (0,1,0,1)) followed by Conv2d(Cin, Cout, 3, stride=2, padding=0)."""
    B, C, H, W = x_nchw.shape
    cout, cin, kh_, kw_ = w_oihw.shape
    assert (cin, kh_, kw_) == (C, 3, 3)

    ho = (H + 1 - 3) // 2 + 1
    wo = (W + 1 - 3) // 2 + 1
    hp = 2 * ho + 2                     # even; row 2*ho is the F.pad zero row
    wp = 2 * wo + 2                     # even; col 2*wo is the F.pad zero col
    np_out = ((cout + 127) // 128) * 128

    # ---- input prep: ONE fused pass (transpose + pad + bf16 cast), then a free
    #      row-major regroup that pairs adjacent W pixels into the lane dim.
    x_nhwc = jnp.pad(jnp.transpose(x_nchw, (0, 2, 3, 1)).astype(jnp.bfloat16),
                     ((0, 0), (0, hp - H), (0, wp - W), (0, 0)))
    xg = x_nhwc.reshape(B, hp // 2, wp, 2 * C)              # pure metadata reshape

    # ---- weights / bias prep (tiny, done once): K order matches the kernel's A build.
    w01 = jnp.transpose(w_oihw[:, :, :, 0:2], (2, 3, 1, 0)).reshape(6 * cin, cout)
    w2 = jnp.transpose(w_oihw[:, :, :, 2], (2, 1, 0)).reshape(3 * cin, cout)
    wk = jnp.concatenate([w01, w2], axis=0)                 # (9*cin, cout)
    wk = jnp.pad(wk, ((0, 0), (0, np_out - cout))).astype(jnp.bfloat16)
    bvec = jnp.pad(bias, (0, np_out - cout)).reshape(1, np_out).astype(jnp.float32)

    # ---- blocking: fold batch elements to raise M per MXU push, keep >=2 grid steps.
    bb = _pick_batch_block(B, ho * wo)
    grid = (B // bb,)
    m_rows = bb * ho * wo

    # Explicit VMEM budget (double-buffered ins/outs + scratch), clamped to HW limits.
    bytes_in = bb * (hp // 2) * wp * 2 * cin * 2
    bytes_w = 9 * cin * np_out * 2
    bytes_b = np_out * 4
    bytes_out = bb * ho * wo * np_out * 4
    bytes_scratch = m_rows * 9 * cin * 2
    vmem_est = 2 * (bytes_in + bytes_w + bytes_b + bytes_out) + bytes_scratch
    vmem_limit = int(min(max(2 * vmem_est, 8 << 20), 64 << 20))

    out = pl.pallas_call(
        functools.partial(_downsample_kernel, ho=ho, wo=wo, cin=cin, bb=bb),
        out_shape=jax.ShapeDtypeStruct((B, ho, wo, np_out), jnp.float32),
        grid=grid,
        in_specs=[
            pl.BlockSpec((bb, hp // 2, wp, 2 * cin), lambda i: (i, 0, 0, 0)),
            pl.BlockSpec((9 * cin, np_out), lambda i: (0, 0)),
            pl.BlockSpec((1, np_out), lambda i: (0, 0)),
        ],
        out_specs=pl.BlockSpec((bb, ho, wo, np_out), lambda i: (i, 0, 0, 0)),
        scratch_shapes=[pltpu.VMEM((m_rows, 9 * cin), jnp.bfloat16)],
        compiler_params=pltpu.CompilerParams(
            dimension_semantics=("parallel",),
            vmem_limit_bytes=vmem_limit),
    )(xg, wk, bvec)

    # ---- one fused output pass: drop lane padding + NHWC->NCHW for module parity.
    return jnp.transpose(out[..., :cout], (0, 3, 1, 2))


downsample_jit = jax.jit(downsample)


# ----------------------------------------------------------------------------
# Main
# ----------------------------------------------------------------------------

if __name__ == "__main__":
    B, C, H, W = 2, 64, 16, 16
    root = jax.random.PRNGKey(0)
    kx, kw_key, kb = jax.random.split(root, 3)

    x = jax.random.normal(kx, (B, C, H, W), jnp.float32)
    w = 0.05 * jax.random.normal(kw_key, (C, C, 3, 3), jnp.float32)
    bias = 0.1 * jax.random.normal(kb, (C,), jnp.float32)

    y = downsample_jit(x, w, bias)
    jax.block_until_ready(y)
    assert y.shape == (B, C, 8, 8), y.shape

    # Reference: same pad + stride-2 valid conv (f32 XLA conv). bf16 matmul
    # operands give ~1e-3 abs error at these magnitudes; tolerance is generous.
    ref = jax.lax.conv_general_dilated(
        x, w, window_strides=(2, 2), padding=((0, 1), (0, 1)),
        dimension_numbers=("NCHW", "OIHW", "NCHW")) + bias.reshape(1, C, 1, 1)
    err = float(jnp.max(jnp.abs(y - ref)))
    assert err < 5e-2, f"max abs error {err}"

    print("KERNEL_OK")
</pallas_src>

<mosaic_0001>
module attributes {stable_mosaic.version = 11 : i64} {
  func.func @_downsample_kernel(%arg0: i32, %arg1: memref<1x9x18x128xbf16, #tpu.memory_space<vmem>>, %arg2: memref<576x128xbf16, #tpu.memory_space<vmem>>, %arg3: memref<1x128xf32, #tpu.memory_space<vmem>>, %arg4: memref<1x8x8x128xf32, #tpu.memory_space<vmem>>, %arg5: memref<64x576xbf16, #tpu.memory_space<vmem>>) attributes {dimension_semantics = [#tpu.dimension_semantics<parallel>], iteration_bounds = array<i64: 2>, scalar_prefetch = 0 : i64, scratch_operands = 1 : i64, tpu.core_type = #tpu.core_type<tc>, window_params = [{transform_indices = @transform_0, window_bounds = array<i64: 1, 9, 18, 128>}, {pipeline_mode = #tpu.pipeline_mode<synchronous>, transform_indices = @transform_1, window_bounds = array<i64: 576, 128>}, {pipeline_mode = #tpu.pipeline_mode<synchronous>, transform_indices = @transform_2, window_bounds = array<i64: 1, 128>}, {transform_indices = @transform_3, window_bounds = array<i64: 1, 8, 8, 128>}]} {
    %c0 = arith.constant 0 : index
    %c0_0 = arith.constant 0 : index
    %c0_1 = arith.constant 0 : index
    %c0_2 = arith.constant 0 : index
    %0 = vector.load %arg1[%c0, %c0_0, %c0_1, %c0_2] : memref<1x9x18x128xbf16, #tpu.memory_space<vmem>>, vector<1x8x8x128xbf16>
    %1 = vector.shape_cast %0 : vector<1x8x8x128xbf16> to vector<64x128xbf16>
    %c0_3 = arith.constant 0 : index
    %c0_4 = arith.constant 0 : index
    %2 = vector.load %arg5[%c0_3, %c0_4] : memref<64x576xbf16, #tpu.memory_space<vmem>>, vector<64x128xbf16>
    tpu.vector_store %arg5[%c0_3, %c0_4], %1 {strides = array<i32>} : memref<64x576xbf16, #tpu.memory_space<vmem>>, vector<64x128xbf16>,
    %c0_5 = arith.constant 0 : index
    %c0_6 = arith.constant 0 : index
    %c1 = arith.constant 1 : index
    %c0_7 = arith.constant 0 : index
    %3 = vector.load %arg1[%c0_5, %c0_6, %c1, %c0_7] : memref<1x9x18x128xbf16, #tpu.memory_space<vmem>>, vector<1x8x8x64xbf16>
    %4 = vector.shape_cast %3 : vector<1x8x8x64xbf16> to vector<64x64xbf16>
    %c0_8 = arith.constant 0 : index
    %c384 = arith.constant 384 : index
    %5 = vector.load %arg5[%c0_8, %c384] : memref<64x576xbf16, #tpu.memory_space<vmem>>, vector<64x64xbf16>
    tpu.vector_store %arg5[%c0_8, %c384], %4 {strides = array<i32>} : memref<64x576xbf16, #tpu.memory_space<vmem>>, vector<64x64xbf16>,
    %c0_9 = arith.constant 0 : index
    %c0_10 = arith.constant 0 : index
    %c9 = arith.constant 9 : index
    %c0_11 = arith.constant 0 : index
    %6 = vector.load %arg1[%c0_9, %c0_10, %c9, %c0_11] : memref<1x9x18x128xbf16, #tpu.memory_space<vmem>>, vector<1x8x8x128xbf16>
    %7 = vector.shape_cast %6 : vector<1x8x8x128xbf16> to vector<64x128xbf16>
    %c0_12 = arith.constant 0 : index
    %c128 = arith.constant 128 : index
    %8 = vector.load %arg5[%c0_12, %c128] : memref<64x576xbf16, #tpu.memory_space<vmem>>, vector<64x128xbf16>
    tpu.vector_store %arg5[%c0_12, %c128], %7 {strides = array<i32>} : memref<64x576xbf16, #tpu.memory_space<vmem>>, vector<64x128xbf16>,
    %c0_13 = arith.constant 0 : index
    %c0_14 = arith.constant 0 : index
    %c10 = arith.constant 10 : index
    %c0_15 = arith.constant 0 : index
    %9 = vector.load %arg1[%c0_13, %c0_14, %c10, %c0_15] : memref<1x9x18x128xbf16, #tpu.memory_space<vmem>>, vector<1x8x8x64xbf16>
    %10 = vector.shape_cast %9 : vector<1x8x8x64xbf16> to vector<64x64xbf16>
    %c0_16 = arith.constant 0 : index
    %c448 = arith.constant 448 : index
    %11 = vector.load %arg5[%c0_16, %c448] : memref<64x576xbf16, #tpu.memory_space<vmem>>, vector<64x64xbf16>
    tpu.vector_store %arg5[%c0_16, %c448], %10 {strides = array<i32>} : memref<64x576xbf16, #tpu.memory_space<vmem>>, vector<64x64xbf16>,
    %c0_17 = arith.constant 0 : index
    %c1_18 = arith.constant 1 : index
    %c0_19 = arith.constant 0 : index
    %c0_20 = arith.constant 0 : index
    %12 = vector.load %arg1[%c0_17, %c1_18, %c0_19, %c0_20] : memref<1x9x18x128xbf16, #tpu.memory_space<vmem>>, vector<1x8x8x128xbf16>
    %13 = vector.shape_cast %12 : vector<1x8x8x128xbf16> to vector<64x128xbf16>
    %c0_21 = arith.constant 0 : index
    %c256 = arith.constant 256 : index
    %14 = vector.load %arg5[%c0_21, %c256] : memref<64x576xbf16, #tpu.memory_space<vmem>>, vector<64x128xbf16>
    tpu.vector_store %arg5[%c0_21, %c256], %13 {strides = array<i32>} : memref<64x576xbf16, #tpu.memory_space<vmem>>, vector<64x128xbf16>,
    %c0_22 = arith.constant 0 : index
    %c1_23 = arith.constant 1 : index
    %c1_24 = arith.constant 1 : index
    %c0_25 = arith.constant 0 : index
    %15 = vector.load %arg1[%c0_22, %c1_23, %c1_24, %c0_25] : memref<1x9x18x128xbf16, #tpu.memory_space<vmem>>, vector<1x8x8x64xbf16>
    %16 = vector.shape_cast %15 : vector<1x8x8x64xbf16> to vector<64x64xbf16>
    %c0_26 = arith.constant 0 : index
    %c512 = arith.constant 512 : index
    %17 = vector.load %arg5[%c0_26, %c512] : memref<64x576xbf16, #tpu.memory_space<vmem>>, vector<64x64xbf16>
    tpu.vector_store %arg5[%c0_26, %c512], %16 {strides = array<i32>} : memref<64x576xbf16, #tpu.memory_space<vmem>>, vector<64x64xbf16>,
    %c0_27 = arith.constant 0 : index
    %c0_28 = arith.constant 0 : index
    %18 = vector.load %arg5[%c0_27, %c0_28] : memref<64x576xbf16, #tpu.memory_space<vmem>>, vector<64x576xbf16>
    %c0_29 = arith.constant 0 : index
    %c0_30 = arith.constant 0 : index
    %19 = vector.load %arg2[%c0_29, %c0_30] : memref<576x128xbf16, #tpu.memory_space<vmem>>, vector<576x128xbf16>
    %cst = arith.constant dense<0.000000e+00> : vector<64x128xf32>
    %20 = tpu.matmul %18, %19, %cst {dimension_numbers = #tpu.dot_dimension_numbers<[1], [0], [0], [1], [0, 0, 1, 1], [], []>} : vector<64x576xbf16>, vector<576x128xbf16>, vector<64x128xf32> -> vector<64x128xf32>
    %c0_31 = arith.constant 0 : index
    %c0_32 = arith.constant 0 : index
    %21 = vector.load %arg3[%c0_31, %c0_32] : memref<1x128xf32, #tpu.memory_space<vmem>>, vector<1x128xf32>
    %22 = vector.broadcast %21 : vector<1x128xf32> to vector<64x128xf32>
    %23 = arith.addf %20, %22 : vector<64x128xf32>
    %24 = vector.shape_cast %23 : vector<64x128xf32> to vector<1x8x8x128xf32>
    %c0_33 = arith.constant 0 : index
    %c0_34 = arith.constant 0 : index
    %c0_35 = arith.constant 0 : index
    %c0_36 = arith.constant 0 : index
    %25 = vector.load %arg4[%c0_33, %c0_34, %c0_35, %c0_36] : memref<1x8x8x128xf32, #tpu.memory_space<vmem>>, vector<1x8x8x128xf32>
    tpu.vector_store %arg4[%c0_33, %c0_34, %c0_35, %c0_36], %24 {strides = array<i32>} : memref<1x8x8x128xf32, #tpu.memory_space<vmem>>, vector<1x8x8x128xf32>,
    return
  }
  func.func @transform_0(%arg0: i32) -> (i32, i32, i32, i32) {
    %c0_i32 = arith.constant 0 : i32
    %c0_i32_0 = arith.constant 0 : i32
    %c0_i32_1 = arith.constant 0 : i32
    %c0_i32_2 = arith.constant 0 : i32
    return %arg0, %c0_i32, %c0_i32_0, %c0_i32_1 : i32, i32, i32, i32
  }
  func.func @transform_1(%arg0: i32) -> (i32, i32) {
    %c0_i32 = arith.constant 0 : i32
    %c0_i32_0 = arith.constant 0 : i32
    %c0_i32_1 = arith.constant 0 : i32
    return %c0_i32, %c0_i32_0 : i32, i32
  }
  func.func @transform_2(%arg0: i32) -> (i32, i32) {
    %c0_i32 = arith.constant 0 : i32
    %c0_i32_0 = arith.constant 0 : i32
    %c0_i32_1 = arith.constant 0 : i32
    return %c0_i32, %c0_i32_0 : i32, i32
  }
  func.func @transform_3(%arg0: i32) -> (i32, i32, i32, i32) {
    %c0_i32 = arith.constant 0 : i32
    %c0_i32_0 = arith.constant 0 : i32
    %c0_i32_1 = arith.constant 0 : i32
    %c0_i32_2 = arith.constant 0 : i32
    return %arg0, %c0_i32, %c0_i32_0, %c0_i32_1 : i32, i32, i32, i32
  }
}

</mosaic_0001>

<bundles_post_ra>
// kernel: downsample.1
= control target key start
LH: loop header
LB: loop body
LE: loop exit
PB: predicated region body
PF: predicated region fallthrough
CT: control target
= control target key end

     0   :  { %s1761_s12 = smov 0   ;;  %s2111_s0 = inlined_call_operand.vmem [shape: bf16[2,9,18,128], index: 0, kind: input, shape index: {}]   ;;  %s2112_s1 = inlined_call_operand.vmem [shape: bf16[576,128], index: 1, kind: input, shape index: {}]   ;;  %s2113_s2 = inlined_call_operand.vmem [shape: f32[1,128], index: 2, kind: input, shape index: {}]   ;;  %s2114_s3 = inlined_call_operand.vmem [shape: f32[2,8,8,128], index: 3, kind: output, shape index: {}]  }
   0x1 LB: > { %s1378_s13 = sadd.s32 4294967295, %s1738_s12   ;;  %p1382_p0 = scmp.ge.s32.totalorder %s1738_s12, 1  ;;  %s1738_s12 = sphi %s1761_s12, %s13_s12  }
   0x2   : > { %p137_p1 = scmp.lt.s32.totalorder %s1738_s12, 3 }
   0x4   : > { %p138_p2 = pnand %p1382_p0, %p137_p1 }
   0x5   : > { %p161_p3 = scmp.lt.s32.totalorder (!%p138_p2), %s1378_s13, 1  ;;  %s1740_s26 = smov (!%p138_p2), 64  }
   0x6   : > { %141 = sbr.rel (%p138_p2) target bundleno = 345 (0x159), region = 32 }
   0xb   : > { %v1676_v0 = vld [vmem:[%s2112_s1 + $0x38] sm:$0xff]  ;;  %s2120_s13 = smov (!%p161_p3, %s1378_s13), 1  ;;  %v1675_v1 = vld [vmem:[%s2112_s1 + $0x30] sm:$0xff]  ;;  %vm512_vm0 = vcmask 1042432   ;;  %vm513_vm1 = vcmask 1046532   ;;  %v1674_v3 = vld [vmem:[%s2112_s1 + $0x28] sm:$0xff] }
   0xc   : > { %1706 = vmatpush.bf16.msra.mxu2 %v1676_v0  ;;  %1705 = vmatpush.bf16.msra.mxu1 %v1676_v0  ;;  %s1721_s18 = smul.u32 108, %s2120_s13  ;;  %vm1783_vm2 = vmor %vm512_vm0, %vm513_vm1  ;;  %v1673_v15 = vld [vmem:[%s2112_s1 + $0x20] sm:$0xff]  ;;  %v1672_v27 = vld [vmem:[%s2112_s1 + $0x18] sm:$0xff]  ;;  %vm204_vm3 = vsmask.f32 3328  ;;  %vm327_vm6 = vcmask 519168  }
   0xd   : > { %1170 = vmatpush.bf16.msra.mxu0 %v1676_v0  ;;  %v1671_v36 = vld [vmem:[%s2112_s1 + $0x10] sm:$0xff]  ;;  %v1670_v38 = vld [vmem:[%s2112_s1 + $0x8] sm:$0xff]  ;;  %v1669_v52 = vld [vmem:[%s2112_s1] sm:$0xff]  ;;  %vm205_vm4 = vsmask.f32 7440  ;;  %vm1157_vm7 = vcmask 523264  }
   0xe   : > { %s1781_s21 = scalar_lea.vmem %s2111_s0, %s1721_s18  ;;  %v1692_v53 = vld [vmem:[%s2112_s1 + $0xb8] sm:$0xff]  ;;  %vm1873_vm5 = vmor %vm204_vm3, %vm205_vm4  ;;  %vm571_vm8 = vcmask 1043968   ;;  %s1648_s19 = sshll.u32 %s2120_s13, 6 }
   0xf   : > { %v480_v4 = vld [vmem:[%s1781_s21 + $0x4] sm:$0xe]  ;;  %v481_v5 = vld [vmem:[%s1781_s21 + $0x8] sm:$0x1]  ;;  %v484_v6 = vld [vmem:[%s1781_s21 + $0x1c] sm:$0xe]  ;;  %s2090_s23 = scalar_lea.vmem %s2114_s3, %s1648_s19 }
  0x10   : > { %1708 = vmatpush.bf16.msra.mxu2 %v1675_v1  ;;  %1707 = vmatpush.bf16.msra.mxu1 %v1675_v1  ;;  %v1386_v7 = vrot.slane %v480_v4, 9  ;;  %v517_v8 = vrot.slane %v481_v5, 5  ;;  %v485_v9 = vld [vmem:[%s1781_s21 + $0x20] sm:$0x1]  ;;  %v1388_v10 = vrot.slane %v484_v6, 9  ;;  %v1684_v57 = vld [vmem:[%s2112_s1 + $0x78] sm:$0xff] }
  0x11   : > { %1171 = vmatpush.bf16.msra.mxu0 %v1675_v1  ;;  %v525_v11 = vrot.slane %v485_v9, 5  ;;  %v482_v12 = vld [vmem:[%s1781_s21 + $0x10] sm:$0xe]  ;;  %v483_v13 = vld [vmem:[%s1781_s21 + $0x14] sm:$0x1] }
  0x12   : > { %v518_v14 = vsel %vm1783_vm2, %v1386_v7, %v517_v8  ;;  %v486_v16 = vld [vmem:[%s1781_s21 + $0x28] sm:$0xe]  ;;  %v487_v17 = vld [vmem:[%s1781_s21 + $0x2c] sm:$0x1]  ;;  %v1387_v19 = vrot.slane %v482_v12, 9  ;;  %v521_v20 = vrot.slane %v483_v13, 5 }
  0x13   : > { %547 = vrot.lane.b32.xlu0 %v518_v14, %s1740_s26  ;;  %v526_v18 = vsel %vm1783_vm2, %v1388_v10, %v525_v11  ;;  %v174_v21 = vld [vmem:[%s1781_s21 + $0x18] sm:$0xf]  ;;  %v175_v22 = vld [vmem:[%s1781_s21 + $0x24] sm:$0xf]  ;;  %v178_v23 = vld [vmem:[%s1781_s21 + $0x48] sm:$0xf] }
  0x14   : > { %1710 = vmatpush.bf16.msra.mxu2 %v1674_v3  ;;  %1709 = vmatpush.bf16.msra.mxu1 %v1674_v3  ;;  %182 = vst [vmem:[#allocation2 + $0x28] sm:$0xf] %v174_v21  ;;  %v179_v24 = vld [vmem:[%s1781_s21 + $0x54] sm:$0xf]  ;;  %v1389_v25 = vrot.slane %v486_v16, 9  ;;  %v529_v26 = vrot.slane %v487_v17, 5  ;;  %v522_v30 = vsel %vm1783_vm2, %v1387_v19, %v521_v20 }
  0x15   : > { %1172 = vmatpush.bf16.msra.mxu0 %v1674_v3  ;;  %551 = vrot.lane.b32.xlu1 %v526_v18, %s1740_s26  ;;  %183 = vst [vmem:[#allocation2 + $0x3c] sm:$0xf] %v175_v22  ;;  %v488_v28 = vld [vmem:[%s1781_s21 + $0x34] sm:$0xe]  ;;  %v489_v29 = vld [vmem:[%s1781_s21 + $0x38] sm:$0x1] }
  0x16   : > { %186 = vst [vmem:[#allocation2 + $0x78] sm:$0xf] %v178_v23  ;;  %v1390_v31 = vrot.slane %v488_v28, 9  ;;  %v533_v32 = vrot.slane %v489_v29, 5  ;;  %v176_v33 = vld [vmem:[%s1781_s21 + $0x30] sm:$0xf]  ;;  %v530_v35 = vsel %vm1783_vm2, %v1389_v25, %v529_v26 }
  0x17   : > { %187 = vst [vmem:[#allocation2 + $0x8c] sm:$0xf] %v179_v24  ;;  %v177_v34 = vld [vmem:[%s1781_s21 + $0x3c] sm:$0xf]  ;;  %v490_v41 = vld [vmem:[%s1781_s21 + $0x40] sm:$0xe] }
  0x18   : > { %1712 = vmatpush.bf16.msra.mxu2 %v1673_v15  ;;  %1711 = vmatpush.bf16.msra.mxu1 %v1673_v15  ;;  %184 = vst [vmem:[#allocation2 + $0x50] sm:$0xf] %v176_v33  ;;  %v534_v37 = vsel %vm1783_vm2, %v1390_v31, %v533_v32  ;;  %v491_v42 = vld [vmem:[%s1781_s21 + $0x44] sm:$0x1]  ;;  %v494_v43 = vld [vmem:[%s1781_s21 + $0x58] sm:$0xe] }
  0x19   : > { %1173 = vmatpush.bf16.msra.mxu0 %v1673_v15  ;;  %185 = vst [vmem:[#allocation2 + $0x64] sm:$0xf] %v177_v34  ;;  %555 = vrot.lane.b32.xlu2 %v534_v37, %s1740_s26  ;;  %v1391_v45 = vrot.slane %v490_v41, 9  ;;  %v537_v46 = vrot.slane %v491_v42, 5  ;;  %v495_v47 = vld [vmem:[%s1781_s21 + $0x5c] sm:$0x1] }
  0x1a   : > { %v1393_v49 = vrot.slane %v494_v43, 9  ;;  %v545_v50 = vrot.slane %v495_v47, 5  ;;  %v492_v51 = vld [vmem:[%s1781_s21 + $0x4c] sm:$0xe]  ;;  %v493_v55 = vld [vmem:[%s1781_s21 + $0x50] sm:$0x1] }
  0x1b   : > { %549 = vrot.lane.b32.xlu0 %v522_v30, %s1740_s26  ;;  %v1440_v39 = vld [vmem:[#allocation2 + $0x28] sm:$0xf]  ;;  %v538_v54 = vsel %vm1783_vm2, %v1391_v45, %v537_v46  ;;  %v1392_v56 = vrot.slane %v492_v51, 9  ;;  %v541_v59 = vrot.slane %v493_v55, 5  ;;  %v1394_v60 = vld [vmem:[%s1781_s21 + $0xc] sm:$0xf] }
  0x1c   : > { %1714 = vmatpush.bf16.msra.mxu2 %v1672_v27  ;;  %1713 = vmatpush.bf16.msra.mxu1 %v1672_v27  ;;  %v1656_v40 = vld [vmem:[#allocation2 + $0x38] sm:$0xf0]  ;;  %v546_v58 = vsel %vm1783_vm2, %v1393_v49, %v545_v50  ;;  %v1395_v61 = vld [vmem:[%s1781_s21 + $0x18] sm:$0xf]  ;;  %589 = vst [vmem:[#allocation2 + $0x8] sm:$0xf] %v1394_v60 }
  0x1d   : > { %553 = vrot.lane.b32.xlu1 %v530_v35, %s1740_s26  ;;  %1174 = vmatpush.bf16.msra.mxu0 %v1672_v27  ;;  %v1480_v44 = vld [vmem:[#allocation2 + $0x78] sm:$0xf]  ;;  %v1441_v62 = vor.u32 %v1656_v40, %v1440_v39  ;;  %v336_v0 = vld [vmem:[%s1781_s21 + $0x4] sm:$0xf]  ;;  %v338_v1 = vld [vmem:[%s1781_s21 + $0x10] sm:$0xf]  ;;  %v542_v4 = vsel %vm1783_vm2, %v1392_v56, %v541_v59 }
  0x1e   : > { %v1666_v48 = vld [vmem:[#allocation2 + $0x88] sm:$0xf0]  ;;  %v1691_v3 = vld [vmem:[%s2112_s1 + $0xb0] sm:$0xff]  ;;  %590 = vst [vmem:[#allocation2 + $0x1c] sm:$0xf] %v1395_v61  ;;  %v353_v5 = vshrl.u32 %v336_v0, 16 }
  0x1f   : > { %v1481_v63 = vor.u32 %v1666_v48, %v1480_v44  ;;  %v356_v6 = vshll.u32 %v336_v0, 16  ;;  %v367_v7 = vshrl.u32 %v338_v1, 16  ;;  %v1683_v8 = vld [vmem:[%s2112_s1 + $0x70] sm:$0xff]  ;;  %v370_v9 = vshll.u32 %v338_v1, 16  ;;  %v337_v10 = vld [vmem:[%s1781_s21 + $0x8] sm:$0x1] }
  0x20   : > { %1716 = vmatpush.bf16.msra.mxu2 %v1671_v36  ;;  %1715 = vmatpush.bf16.msra.mxu1 %v1671_v36  ;;  %v339_v2 = vld [vmem:[%s1781_s21 + $0x14] sm:$0x1]  ;;  %v355_v11 = vrot.slane %v353_v5, 4  ;;  %v362_v13 = vshll.u32 %v337_v10, 16  ;;  %v1396_v18 = vld [vmem:[%s1781_s21 + $0x24] sm:$0xf] }
  0x21   : > { %1175 = vmatpush.bf16.msra.mxu0 %v1671_v36  ;;  %557 = vrot.lane.b32.xlu2 %v538_v54, %s1740_s26  ;;  %v358_v12 = vrot.slane %v356_v6, 5  ;;  %v369_v14 = vrot.slane %v367_v7, 4  ;;  %v372_v15 = vrot.slane %v370_v9, 5  ;;  %v376_v16 = vshll.u32 %v339_v2, 16  ;;  %v1397_v19 = vld [vmem:[%s1781_s21 + $0x30] sm:$0xf] }
  0x22   : > { %v364_v21 = vrot.slane %v362_v13, 5  ;;  %591 = vst [vmem:[#allocation2 + $0x30] sm:$0xf] %v1396_v18  ;;  %v1690_v24 = vld [vmem:[%s2112_s1 + $0xa8] sm:$0xff]  ;;  %v1689_v30 = vld [vmem:[%s2112_s1 + $0xa0] sm:$0xff]  ;;  %v1688_v36 = vld [vmem:[%s2112_s1 + $0x98] sm:$0xff] }
  0x23   : > { %559 = vrot.lane.b32.xlu0 %v542_v4, %s1740_s26  ;;  %v359_v17 = vor.u32 %v358_v12, %v355_v11  ;;  %v373_v22 = vor.u32 %v372_v15, %v369_v14  ;;  %v378_v23 = vrot.slane %v376_v16, 5  ;;  %v1682_v25 = vld [vmem:[%s2112_s1 + $0x68] sm:$0xff]  ;;  %592 = vst [vmem:[#allocation2 + $0x44] sm:$0xf] %v1397_v19  ;;  %v1681_v31 = vld [vmem:[%s2112_s1 + $0x60] sm:$0xff]  ;;  %v1680_v37 = vld [vmem:[%s2112_s1 + $0x58] sm:$0xff] }
  0x24   : > { %1718 = vmatpush.bf16.msra.mxu2 %v1670_v38  ;;  %1717 = vmatpush.bf16.msra.mxu1 %v1670_v38  ;;  %v1460_v32 = vld [vmem:[#allocation2 + $0x50] sm:$0xf]  ;;  %v1661_v33 = vld [vmem:[#allocation2 + $0x60] sm:$0xf0]  ;;  %v340_v34 = vld [vmem:[%s1781_s21 + $0x1c] sm:$0xf] }
  0x25   : > { %561 = vrot.lane.b32.xlu1 %v546_v58, %s1740_s26  ;;  %1176 = vmatpush.bf16.msra.mxu0 %v1670_v38  ;;  %v360_v26 = vrot.slane %v359_v17, 4  ;;  %v374_v27 = vrot.slane %v373_v22, 4  ;;  %v342_v35 = vld [vmem:[%s1781_s21 + $0x28] sm:$0xf]  ;;  %v381_v38 = vshrl.u32 %v340_v34, 16  ;;  %v384_v39 = vshll.u32 %v340_v34, 16 }
  0x26   : > { %v395_v40 = vshrl.u32 %v342_v35, 16  ;;  %v398_v41 = vshll.u32 %v342_v35, 16  ;;  %v1461_v42 = vor.u32 %v1661_v33, %v1460_v32  ;;  %v341_v46 = vld [vmem:[%s1781_s21 + $0x20] sm:$0x1]  ;;  %v343_v47 = vld [vmem:[%s1781_s21 + $0x2c] sm:$0x1] }
  0x27   : > { %v365_v28 = vsel %vm1873_vm5, %v360_v26, %v364_v21  ;;  %v379_v29 = vsel %vm1873_vm5, %v374_v27, %v378_v23  ;;  %v383_v43 = vrot.slane %v381_v38, 4  ;;  %v386_v44 = vrot.slane %v384_v39, 5  ;;  %v1687_v48 = vld [vmem:[%s2112_s1 + $0x90] sm:$0xff]  ;;  %v1399_v58 = vld [vmem:[%s1781_s21 + $0x48] sm:$0xf]  ;;  %v1685_v1 = vld [vmem:[%s2112_s1 + $0x80] sm:$0xff] }
  0x28   : > { %1720 = vmatpush.bf16.msra.mxu2 %v1669_v52  ;;  %1719 = vmatpush.bf16.msra.mxu1 %v1669_v52  ;;  %472 = vst [vmem:[#allocation2 + $0x4] sm:$0xf] %v365_v28  ;;  %v397_v45 = vrot.slane %v395_v40, 4  ;;  %v1679_v49 = vld [vmem:[%s2112_s1 + $0x50] sm:$0xff]  ;;  %v390_v51 = vshll.u32 %v341_v46, 16  ;;  %v1686_v60 = vld [vmem:[%s2112_s1 + $0x88] sm:$0xff] }
  0x29   : > { %1177 = vmatpush.bf16.msra.mxu0 %v1669_v52  ;;  %473 = vst [vmem:[#allocation2 + $0x18] sm:$0xf] %v379_v29  ;;  %v387_v50 = vor.u32 %v386_v44, %v383_v43  ;;  %v400_v52 = vrot.slane %v398_v41, 5  ;;  %v1678_v61 = vld [vmem:[%s2112_s1 + $0x48] sm:$0xff]  ;;  %v1652_v4 = vld [vmem:[#allocation2 + $0x18] sm:$0xf0] }
  0x2a   : > { %v392_v55 = vrot.slane %v390_v51, 5  ;;  %594 = vst [vmem:[#allocation2 + $0x6c] sm:$0xf] %v1399_v58  ;;  %v1677_v5 = vld [vmem:[%s2112_s1 + $0x40] sm:$0xff]  ;;  %v344_v9 = vld [vmem:[%s1781_s21 + $0x34] sm:$0xf] }
  0x2b   : > { %1183 = vmatmul.bf16.vlgmr.msra.gmra.mxu1 %v1441_v62  ;;  %1193 = vmatmul.bf16.vlgmr.msra.gmra.mxu2 %v1481_v63  ;;  %v388_v54 = vrot.slane %v387_v50, 4  ;;  %v401_v56 = vor.u32 %v400_v52, %v397_v45  ;;  %v346_v10 = vld [vmem:[%s1781_s21 + $0x40] sm:$0xf]  ;;  %v409_v2 = vshrl.u32 %v344_v9, 16  ;;  %v412_v11 = vshll.u32 %v344_v9, 16  ;;  %v1700_v29 = vld [vmem:[%s2112_s1 + $0xf8] sm:$0xff] }
  0x2c   : > { %1228 = vmatpush.bf16.msrb.mxu2 %v1692_v53  ;;  %1199 = vmatpush.bf16.msrb.mxu1 %v1684_v57  ;;  %v404_v53 = vshll.u32 %v343_v47, 16  ;;  %v1398_v57 = vld [vmem:[%s1781_s21 + $0x3c] sm:$0xf]  ;;  %v423_v12 = vshrl.u32 %v346_v10, 16  ;;  %v426_v13 = vshll.u32 %v346_v10, 16  ;;  %v1699_v33 = vld [vmem:[%s2112_s1 + $0xf0] sm:$0xff] }
  0x2d   : > { %593 = vst [vmem:[#allocation2 + $0x58] sm:$0xf] %v1398_v57  ;;  %v393_v62 = vsel %vm1873_vm5, %v388_v54, %v392_v55  ;;  %v402_v63 = vrot.slane %v401_v56, 4  ;;  %v411_v15 = vrot.slane %v409_v2, 4  ;;  %v414_v16 = vrot.slane %v412_v11, 5  ;;  %1257 = vmatpush.bf16.msra.mxu3 %v1700_v29  ;;  %v1698_v38 = vld [vmem:[%s2112_s1 + $0xe8] sm:$0xff] }
  0x2e   : > { %v406_v59 = vrot.slane %v404_v53, 5  ;;  %474 = vst [vmem:[#allocation2 + $0x2c] sm:$0xf] %v393_v62  ;;  %v425_v17 = vrot.slane %v423_v12, 4  ;;  %v345_v18 = vld [vmem:[%s1781_s21 + $0x38] sm:$0x1] }
  0x2f   : > { %v1649_v6 = vld [vmem:[#allocation2 + $0x4] sm:$0xf]  ;;  %v428_v21 = vrot.slane %v426_v13, 5  ;;  %v415_v22 = vor.u32 %v414_v16, %v411_v15  ;;  %v418_v23 = vshll.u32 %v345_v18, 16  ;;  %v1401_v34 = vld [vmem:[%s1781_s21 + $0x60] sm:$0xf] }
  0x30   : > { %1229 = vmatpush.bf16.msrb.mxu2 %v1691_v3  ;;  %1200 = vmatpush.bf16.msrb.mxu1 %v1683_v8  ;;  %v407_v0 = vsel %vm1873_vm5, %v402_v63, %v406_v59  ;;  %v1428_v3 = vld [vmem:[#allocation2 + $0x8] sm:$0xf]  ;;  %v1422_v8 = vld [vmem:[#allocation2 + $0x14] sm:$0xf0]  ;;  %v347_v19 = vld [vmem:[%s1781_s21 + $0x44] sm:$0x1] }
  0x31   : > { %475 = vst [vmem:[#allocation2 + $0x40] sm:$0xf] %v407_v0  ;;  %v1429_v7 = vor.u32 %v1652_v4, %v1428_v3  ;;  %v1425_v14 = vor.u32 %v1649_v6, %v1422_v8  ;;  %v416_v26 = vrot.slane %v415_v22, 4  ;;  %v420_v27 = vrot.slane %v418_v23, 5  ;;  %1258 = vmatpush.bf16.msra.mxu3 %v1699_v33  ;;  %v350_v43 = vld [vmem:[%s1781_s21 + $0x58] sm:$0xf] }
  0x32   : > { %596 = vst [vmem:[#allocation2 + $0x94] sm:$0xf] %v1401_v34  ;;  %v451_v46 = vshrl.u32 %v350_v43, 16  ;;  %v454_v47 = vshll.u32 %v350_v43, 16  ;;  %v1697_v52 = vld [vmem:[%s2112_s1 + $0xe0] sm:$0xff]  ;;  %v1704_v29 = vld [vmem:[%s2112_s1 + $0x118] sm:$0xff] }
  0x33   : > { %v421_v32 = vsel %vm1873_vm5, %v416_v26, %v420_v27  ;;  %v349_v53 = vld [vmem:[%s1781_s21 + $0x50] sm:$0x1]  ;;  %v351_v55 = vld [vmem:[%s1781_s21 + $0x5c] sm:$0x1]  ;;  %v188_v0 = vld [vmem:[%s1781_s21] sm:$0xf]  ;;  %1290 = vmatpush.bf16.msrb.mxu0 %v1704_v29 }
  0x34   : > { %1230 = vmatpush.bf16.msrb.mxu2 %v1690_v24  ;;  %1201 = vmatpush.bf16.msrb.mxu1 %v1682_v25  ;;  %v432_v24 = vshll.u32 %v347_v19, 16  ;;  %v429_v25 = vor.u32 %v428_v21, %v425_v17  ;;  %476 = vst [vmem:[#allocation2 + $0x54] sm:$0xf] %v421_v32  ;;  %v453_v51 = vrot.slane %v451_v46, 4  ;;  %v456_v54 = vrot.slane %v454_v47, 5  ;;  %v1695_v33 = vld [vmem:[%s2112_s1 + $0xd0] sm:$0xff] }
  0x35   : > { %v1654_v39 = vld [vmem:[#allocation2 + $0x2c] sm:$0xf]  ;;  %1259 = vmatpush.bf16.msra.mxu3 %v1698_v38  ;;  %v446_v57 = vshll.u32 %v349_v53, 16  ;;  %v460_v59 = vshll.u32 %v351_v55, 16  ;;  %v208_v3 = vshrl.u32 %v188_v0, 16  ;;  %v211_v4 = vshll.u32 %v188_v0, 16 }
  0x36   : > { %v434_v28 = vrot.slane %v432_v24, 5  ;;  %v457_v58 = vor.u32 %v456_v54, %v453_v51  ;;  %v172_v6 = vld [vmem:[%s1781_s21] sm:$0xf]  ;;  %v1468_v8 = vld [vmem:[#allocation2 + $0x58] sm:$0xf]  ;;  %v1703_v34 = vld [vmem:[%s2112_s1 + $0x110] sm:$0xff] }
  0x37   : > { %v462_v63 = vrot.slane %v460_v59, 5  ;;  %v210_v9 = vrot.slane %v208_v3, 4  ;;  %v213_v10 = vrot.slane %v211_v4, 5  ;;  %180 = vst [vmem:[#allocation2] sm:$0xf] %v172_v6  ;;  %1291 = vmatpush.bf16.msrb.mxu0 %v1703_v34  ;;  %v1702_v6 = vld [vmem:[%s2112_s1 + $0x108] sm:$0xff] }
  0x38   : > { %1231 = vmatpush.bf16.msrb.mxu2 %v1689_v30  ;;  %1202 = vmatpush.bf16.msrb.mxu1 %v1681_v31  ;;  %v430_v30 = vrot.slane %v429_v25, 4  ;;  %v1400_v31 = vld [vmem:[%s1781_s21 + $0x54] sm:$0xf]  ;;  %v1442_v41 = vld [vmem:[#allocation2 + $0x3c] sm:$0xf0]  ;;  %v458_v62 = vrot.slane %v457_v58, 4 }
  0x39   : > { %595 = vst [vmem:[#allocation2 + $0x80] sm:$0xf] %v1400_v31  ;;  %1260 = vmatpush.bf16.msra.mxu3 %v1697_v52  ;;  %v1662_v2 = vld [vmem:[#allocation2 + $0x68] sm:$0xf0]  ;;  %v189_v11 = vld [vmem:[%s1781_s21 + $0x4] sm:$0x1]  ;;  %v214_v12 = vor.u32 %v213_v10, %v210_v9 }
  0x3a   : > { %v435_v35 = vsel %vm1873_vm5, %v430_v30, %v434_v28  ;;  %v217_v13 = vshll.u32 %v189_v11, 16  ;;  %v1469_v15 = vor.u32 %v1662_v2, %v1468_v8  ;;  %v190_v19 = vld [vmem:[%s1781_s21 + $0xc] sm:$0xf]  ;;  %v1696_v28 = vld [vmem:[%s2112_s1 + $0xd8] sm:$0xff]  ;;  %v194_v53 = vld [vmem:[%s1781_s21 + $0x24] sm:$0xf] }
  0x3b   : > { %1188 = vmatmul.bf16.gmra.mxu1 %v1461_v42  ;;  %477 = vst [vmem:[#allocation2 + $0x68] sm:$0xf] %v435_v35  ;;  %v348_v42 = vld [vmem:[%s1781_s21 + $0x4c] sm:$0xf]  ;;  %v215_v17 = vrot.slane %v214_v12, 4  ;;  %v222_v22 = vshrl.u32 %v190_v19, 16  ;;  %1292 = vmatpush.bf16.msrb.mxu0 %v1702_v6 }
  0x3c   : > { %1232 = vmatpush.bf16.msrb.mxu2 %v1688_v36  ;;  %1203 = vmatpush.bf16.msrb.mxu1 %v1680_v37  ;;  %v1448_v36 = vld [vmem:[#allocation2 + $0x30] sm:$0xf]  ;;  %v1657_v37 = vld [vmem:[#allocation2 + $0x40] sm:$0xf0]  ;;  %v437_v44 = vshrl.u32 %v348_v42, 16  ;;  %v440_v45 = vshll.u32 %v348_v42, 16 }
  0x3d   : > { %v1449_v40 = vor.u32 %v1657_v37, %v1448_v36  ;;  %v219_v18 = vrot.slane %v217_v13, 5  ;;  %v225_v23 = vshll.u32 %v190_v19, 16  ;;  %v1402_v24 = vld [vmem:[%s1781_s21 + $0xc] sm:$0xf]  ;;  %v224_v30 = vrot.slane %v222_v22, 4  ;;  %1261 = vmatpush.bf16.msra.mxu3 %v1696_v28  ;;  %v1693_v12 = vld [vmem:[%s2112_s1 + $0xc0] sm:$0xff] }
  0x3e   : > { %v442_v50 = vrot.slane %v440_v45, 5  ;;  %v1420_v26 = vld [vmem:[#allocation2] sm:$0xf]  ;;  %v192_v35 = vld [vmem:[%s1781_s21 + $0x18] sm:$0xf]  ;;  %v614_v36 = vshrl.u32 %v1402_v24, 16 }
  0x3f   : > { %v220_v21 = vsel %vm1873_vm5, %v215_v17, %v219_v18  ;;  %v227_v31 = vrot.slane %v225_v23, 5  ;;  %v617_v37 = vshll.u32 %v1402_v24, 16  ;;  %v193_v38 = vld [vmem:[%s1781_s21 + $0x1c] sm:$0x1]  ;;  %v1403_v45 = vld [vmem:[%s1781_s21 + $0x10] sm:$0x1] }
  0x40   : > { %1233 = vmatpush.bf16.msrb.mxu2 %v1687_v48  ;;  %1204 = vmatpush.bf16.msrb.mxu1 %v1679_v49  ;;  %v1445_v48 = vor.u32 %v1654_v39, %v1442_v41  ;;  %v439_v49 = vrot.slane %v437_v44, 4  ;;  %328 = vst.msk [vmem:[#allocation2 + $0xc] sm:$0xf] %vm327_vm6, %v220_v21  ;;  %v236_v39 = vshrl.u32 %v192_v35, 16  ;;  %v191_v41 = vld [vmem:[%s1781_s21 + $0x10] sm:$0x1] }
  0x41   : > { %v228_v42 = vor.u32 %v227_v31, %v224_v30  ;;  %v245_v43 = vshll.u32 %v193_v38, 16  ;;  %v231_v44 = vshll.u32 %v191_v41, 16  ;;  %v1404_v46 = vld [vmem:[%s1781_s21 + $0x18] sm:$0xf]  ;;  %v619_v54 = vrot.slane %v617_v37, 5  ;;  %1262 = vmatpush.bf16.msra.mxu3 %v1695_v33  ;;  %v1701_v13 = vld [vmem:[%s2112_s1 + $0x100] sm:$0xff] }
  0x42   : > { %v443_v56 = vor.u32 %v442_v50, %v439_v49  ;;  %v1462_v16 = vld [vmem:[#allocation2 + $0x64] sm:$0xf0]  ;;  %v238_v47 = vrot.slane %v236_v39, 4  ;;  %v616_v50 = vrot.slane %v614_v36, 4  ;;  %v623_v55 = vshll.u32 %v1403_v45, 16  ;;  %1293 = vmatpush.bf16.msrb.mxu0 %v1701_v13 }
  0x43   : > { %v229_v49 = vrot.slane %v228_v42, 4  ;;  %v247_v51 = vrot.slane %v245_v43, 5  ;;  %v233_v52 = vrot.slane %v231_v44, 5  ;;  %v253_v58 = vshll.u32 %v194_v53, 16  ;;  %v195_v8 = vld [vmem:[%s1781_s21 + $0x28] sm:$0x1] }
  0x44   : > { %1234 = vmatpush.bf16.msrb.mxu2 %v1686_v60  ;;  %1205 = vmatpush.bf16.msrb.mxu1 %v1678_v61  ;;  %v444_v60 = vrot.slane %v443_v56, 4  ;;  %v448_v61 = vrot.slane %v446_v57, 5  ;;  %v250_v57 = vshrl.u32 %v194_v53, 16  ;;  %v628_v59 = vshrl.u32 %v1404_v46, 16  ;;  %v1406_v29 = vld [vmem:[%s1781_s21 + $0x24] sm:$0xf] }
  0x45   : > { %v620_v0 = vor.u32 %v619_v54, %v616_v50  ;;  %v631_v3 = vshll.u32 %v1404_v46, 16  ;;  %v255_v10 = vrot.slane %v253_v58, 5  ;;  %v1408_v30 = vld [vmem:[%s1781_s21 + $0x30] sm:$0xf]  ;;  %v645_v33 = vshll.u32 %v1406_v29, 16 }
  0x46   : > { %v252_v9 = vrot.slane %v250_v57, 4  ;;  %v656_v34 = vshrl.u32 %v1408_v30, 16  ;;  %v659_v36 = vshll.u32 %v1408_v30, 16  ;;  %v196_v41 = vld [vmem:[%s1781_s21 + $0x30] sm:$0xf] }
  0x47   : > { %v621_v2 = vrot.slane %v620_v0, 4  ;;  %v647_v38 = vrot.slane %v645_v33, 5  ;;  %v197_v42 = vld [vmem:[%s1781_s21 + $0x34] sm:$0x1]  ;;  %v198_v43 = vld [vmem:[%s1781_s21 + $0x3c] sm:$0xf] }
  0x48   : > { %1235 = vmatpush.bf16.msrb.mxu2 %v1685_v1  ;;  %1206 = vmatpush.bf16.msrb.mxu1 %v1677_v5  ;;  %v449_v1 = vsel %vm1873_vm5, %v444_v60, %v448_v61  ;;  %v463_v5 = vsel %vm1873_vm5, %v458_v62, %v462_v63  ;;  %v1488_v60 = vld [vmem:[#allocation2 + $0x80] sm:$0xf]  ;;  %v1667_v61 = vld [vmem:[#allocation2 + $0x90] sm:$0xf0]  ;;  %v234_v62 = vsel %vm1873_vm5, %v229_v49, %v233_v52  ;;  %v1405_v63 = vld [vmem:[%s1781_s21 + $0x1c] sm:$0x1] }
  0x49   : > { %478 = vst [vmem:[#allocation2 + $0x7c] sm:$0xf] %v449_v1  ;;  %v625_v1 = vrot.slane %v623_v55, 5  ;;  %v256_v18 = vor.u32 %v255_v10, %v252_v9  ;;  %v637_v21 = vshll.u32 %v1405_v63, 16  ;;  %v1489_v22 = vor.u32 %v1667_v61, %v1488_v60  ;;  %v1407_v50 = vld [vmem:[%s1781_s21 + $0x28] sm:$0x1] }
  0x4a   : > { %479 = vst [vmem:[#allocation2 + $0x90] sm:$0xf] %v463_v5  ;;  %v1694_v5 = vld [vmem:[%s2112_s1 + $0xc8] sm:$0xff]  ;;  %v658_v39 = vrot.slane %v656_v34, 4  ;;  %v264_v44 = vshrl.u32 %v196_v41, 16  ;;  %v267_v45 = vshll.u32 %v196_v41, 16 }
  0x4b   : > { %1236 = vmatmul.bf16.vlgmr.msrb.gmra.mxu2 %v1429_v7  ;;  %1207 = vmatmul.bf16.vlgmr.msrb.gmra.mxu1 %v1425_v14  ;;  %v173_v7 = vld [vmem:[%s1781_s21 + $0xc] sm:$0xf]  ;;  %v1659_v14 = vld [vmem:[#allocation2 + $0x54] sm:$0xf]  ;;  %329 = vst.msk [vmem:[#allocation2 + $0x20] sm:$0xf] %vm327_vm6, %v234_v62  ;;  %v626_v19 = vsel %vm1873_vm5, %v621_v2, %v625_v1 }
  0x4c   : > { %181 = vst [vmem:[#allocation2 + $0x14] sm:$0xf] %v173_v7  ;;  %v1465_v25 = vor.u32 %v1659_v14, %v1462_v16  ;;  %1263 = vmatpush.bf16.msra.mxu3 %v1694_v5  ;;  %v259_v14 = vshll.u32 %v195_v8, 16  ;;  %v633_v16 = vrot.slane %v631_v3, 5  ;;  %v273_v46 = vshll.u32 %v197_v42, 16 }
  0x4d   : > { %733 = vst.msk [vmem:[#allocation2 + $0x10] sm:$0xf] %vm327_vm6, %v626_v19  ;;  %v281_v49 = vshll.u32 %v198_v43, 16  ;;  %v661_v52 = vrot.slane %v659_v36, 5  ;;  %v266_v53 = vrot.slane %v264_v44, 4  ;;  %v269_v54 = vrot.slane %v267_v45, 5 }
  0x4e   : > { %v261_v23 = vrot.slane %v259_v14, 5  ;;  %v651_v61 = vshll.u32 %v1407_v50, 16  ;;  %v275_v63 = vrot.slane %v273_v46, 5  ;;  %v1413_v30 = vld [vmem:[%s1781_s21 + $0x4c] sm:$0x1] }
  0x4f   : > { %v283_v58 = vrot.slane %v281_v49, 5  ;;  %v270_v62 = vor.u32 %v269_v54, %v266_v53  ;;  %v662_v0 = vor.u32 %v661_v52, %v658_v39  ;;  %v693_v34 = vshll.u32 %v1413_v30, 16  ;;  %v202_v46 = vld [vmem:[%s1781_s21 + $0x54] sm:$0xf] }
  0x50   : > { %v1664_v7 = vld [vmem:[#allocation2 + $0x7c] sm:$0xf]  ;;  %1264 = vmatpush.bf16.msra.mxu3 %v1693_v12  ;;  %v653_v6 = vrot.slane %v651_v61, 5  ;;  %v309_v49 = vshll.u32 %v202_v46, 16  ;;  %v1414_v52 = vld [vmem:[%s1781_s21 + $0x54] sm:$0xf] }
  0x51   : > { %v1482_v17 = vld [vmem:[#allocation2 + $0x8c] sm:$0xf0]  ;;  %v271_v8 = vrot.slane %v270_v62, 4  ;;  %v663_v2 = vrot.slane %v662_v0, 4  ;;  %v203_v61 = vld [vmem:[%s1781_s21 + $0x58] sm:$0x1] }
  0x52   : > { %v201_v62 = vld [vmem:[%s1781_s21 + $0x4c] sm:$0x1]  ;;  %v315_v0 = vshll.u32 %v203_v61, 16 }
  0x53   : > { %v1651_v27 = vld [vmem:[#allocation2 + $0x10] sm:$0xf0]  ;;  %v276_v12 = vsel %vm1873_vm5, %v271_v8, %v275_v63 }
  0x54   : > { %v1421_v32 = vor.u32 %v1651_v27, %v1420_v26  ;;  %v639_v26 = vrot.slane %v637_v21, 5  ;;  %v1485_v27 = vor.u32 %v1664_v7, %v1482_v17  ;;  %v1436_v57 = vld [vmem:[#allocation2 + $0x10] sm:$0xf]  ;;  %332 = vst.msk [vmem:[#allocation2 + $0x5c] sm:$0xf] %vm327_vm6, %v276_v12 }
  0x55   : > { %v1412_v17 = vld [vmem:[%s1781_s21 + $0x48] sm:$0xf] }
  0x56   : > { %1178 = vmatmul.bf16.vlgmr.msra.gmra.mxu0 %v1421_v32  ;;  %v642_v32 = vshrl.u32 %v1406_v29, 16  ;;  %v1411_v29 = vld [vmem:[%s1781_s21 + $0x40] sm:$0x1] }
  0x57   : > { %v679_v33 = vshll.u32 %v1411_v29, 16 }
  0x58   : > { %v644_v37 = vrot.slane %v642_v32, 4 }
  0x5b   : > { %1241 = vmatmul.bf16.gmra.mxu2 %v1449_v40  ;;  %1212 = vmatmul.bf16.gmra.mxu1 %v1445_v48  ;;  %v239_v40 = vshll.u32 %v192_v35, 16 }
  0x5d   : > { %v241_v48 = vrot.slane %v239_v40, 5 }
  0x5f   : > { %v242_v56 = vor.u32 %v241_v48, %v238_v47  ;;  %v278_v47 = vshrl.u32 %v198_v43, 16  ;;  %v199_v48 = vld [vmem:[%s1781_s21 + $0x40] sm:$0x1] }
  0x61   : > { %v243_v4 = vrot.slane %v242_v56, 4  ;;  %v280_v55 = vrot.slane %v278_v47, 4  ;;  %v1409_v56 = vld [vmem:[%s1781_s21 + $0x34] sm:$0x1]  ;;  %v200_v47 = vld [vmem:[%s1781_s21 + $0x48] sm:$0xf] }
  0x62   : > { %v665_v1 = vshll.u32 %v1409_v56, 16  ;;  %v292_v50 = vshrl.u32 %v200_v47, 16  ;;  %v701_v56 = vshll.u32 %v1414_v52, 16 }
  0x63   : > { %v248_v11 = vsel %vm1873_vm5, %v243_v4, %v247_v51  ;;  %v648_v51 = vor.u32 %v647_v38, %v644_v37  ;;  %v284_v4 = vor.u32 %v283_v58, %v280_v55  ;;  %v681_v37 = vrot.slane %v679_v33, 5 }
  0x64   : > { %330 = vst.msk [vmem:[#allocation2 + $0x34] sm:$0xf] %vm327_vm6, %v248_v11  ;;  %v667_v11 = vrot.slane %v665_v1, 5  ;;  %v695_v38 = vrot.slane %v693_v34, 5  ;;  %v698_v55 = vshrl.u32 %v1414_v52, 16  ;;  %v703_v8 = vrot.slane %v701_v56, 5 }
  0x65   : > { %v649_v60 = vrot.slane %v648_v51, 4  ;;  %v285_v9 = vrot.slane %v284_v4, 4  ;;  %v295_v51 = vshll.u32 %v200_v47, 16  ;;  %v1416_v4 = vld [vmem:[%s1781_s21 + $0x60] sm:$0xf] }
  0x67   : > { %v654_v10 = vsel %vm1873_vm5, %v649_v60, %v653_v6  ;;  %v294_v60 = vrot.slane %v292_v50, 4  ;;  %v297_v1 = vrot.slane %v295_v51, 5  ;;  %v1417_v6 = vld [vmem:[%s1781_s21 + $0x64] sm:$0x1] }
  0x68   : > { %735 = vst.msk [vmem:[#allocation2 + $0x38] sm:$0xf] %vm327_vm6, %v654_v10 }
  0x6b   : > { %1246 = vmatmul.bf16.gmra.mxu2 %v1469_v15  ;;  %1217 = vmatmul.bf16.gmra.mxu1 %v1465_v25  ;;  %v630_v15 = vrot.slane %v628_v59, 4  ;;  %v257_v25 = vrot.slane %v256_v18, 4  ;;  %v287_v59 = vshll.u32 %v199_v48, 16  ;;  %v306_v48 = vshrl.u32 %v202_v46, 16 }
  0x6d   : > { %v634_v24 = vor.u32 %v633_v16, %v630_v15  ;;  %v262_v31 = vsel %vm1873_vm5, %v257_v25, %v261_v23  ;;  %v289_v5 = vrot.slane %v287_v59, 5  ;;  %v668_v15 = vsel %vm1873_vm5, %v663_v2, %v667_v11  ;;  %v1410_v16 = vld [vmem:[%s1781_s21 + $0x3c] sm:$0xf] }
  0x6e   : > { %331 = vst.msk [vmem:[#allocation2 + $0x48] sm:$0xf] %vm327_vm6, %v262_v31  ;;  %v670_v19 = vshrl.u32 %v1410_v16, 16  ;;  %v673_v21 = vshll.u32 %v1410_v16, 16  ;;  %v687_v23 = vshll.u32 %v1412_v17, 16  ;;  %v308_v58 = vrot.slane %v306_v48, 4 }
  0x6f   : > { %v635_v28 = vrot.slane %v634_v24, 4  ;;  %v290_v14 = vsel %vm1873_vm5, %v285_v9, %v289_v5  ;;  %736 = vst.msk [vmem:[#allocation2 + $0x4c] sm:$0xf] %vm327_vm6, %v668_v15  ;;  %v311_v59 = vrot.slane %v309_v49, 5  ;;  %v1415_v5 = vld [vmem:[%s1781_s21 + $0x58] sm:$0x1]  ;;  %v298_v11 = vor.u32 %v297_v1, %v294_v60 }
  0x70   : > { %333 = vst.msk [vmem:[#allocation2 + $0x70] sm:$0xf] %vm327_vm6, %v290_v14  ;;  %v672_v25 = vrot.slane %v670_v19, 4  ;;  %v317_v2 = vrot.slane %v315_v0, 5  ;;  %v707_v16 = vshll.u32 %v1415_v5, 16 }
  0x71   : > { %v640_v35 = vsel %vm1873_vm5, %v635_v28, %v639_v26  ;;  %v675_v26 = vrot.slane %v673_v21, 5  ;;  %v689_v28 = vrot.slane %v687_v23, 5  ;;  %v312_v63 = vor.u32 %v311_v59, %v308_v58  ;;  %v2082_v58 = vld [vmem:[%s2113_s2] ss:$0 sm:$0xff] }
  0x72   : > { %734 = vst.msk [vmem:[#allocation2 + $0x24] sm:$0xf] %vm327_vm6, %v640_v35  ;;  %v299_v21 = vrot.slane %v298_v11, 4 }
  0x73   : > { %v556_v40 = vpop.permute.xlu2 %555  ;;  %v676_v31 = vor.u32 %v675_v26, %v672_v25  ;;  %v313_v10 = vrot.slane %v312_v63, 4  ;;  %v709_v25 = vrot.slane %v707_v16, 5 }
  0x74   : > { %576 = vst.msk [vmem:[#allocation2 + $0x5c] sm:$0xf] %vm571_vm8, %v556_v40  ;;  %v1456_v40 = vld [vmem:[#allocation2 + $0x38] sm:$0xf] }
  0x75   : > { %v677_v35 = vrot.slane %v676_v31, 4  ;;  %v318_v19 = vsel %vm1873_vm5, %v313_v10, %v317_v2 }
  0x76   : > { %v1658_v44 = vld [vmem:[#allocation2 + $0x48] sm:$0xf0]  ;;  %335 = vst.msk [vmem:[#allocation2 + $0x98] sm:$0xf] %vm327_vm6, %v318_v19 }
  0x77   : > { %v682_v42 = vsel %vm1873_vm5, %v677_v35, %v681_v37  ;;  %v1457_v45 = vor.u32 %v1658_v44, %v1456_v40 }
  0x78   : > { %737 = vst.msk [vmem:[#allocation2 + $0x60] sm:$0xf] %vm327_vm6, %v682_v42 }
  0x79   : > { %v1653_v3 = vld [vmem:[#allocation2 + $0x20] sm:$0xf0] }
  0x7a   : > { %v1437_v7 = vor.u32 %v1653_v3, %v1436_v57  ;;  %v301_v3 = vshll.u32 %v201_v62, 16 }
  0x7b   : > { %1251 = vmatmul.bf16.gmra.mxu2 %v1489_v22  ;;  %1222 = vmatmul.bf16.gmra.mxu1 %v1485_v27  ;;  %v558_v13 = vpop.permute.xlu2 %557  ;;  %v684_v22 = vshrl.u32 %v1412_v17, 16  ;;  %v712_v17 = vshrl.u32 %v1416_v4, 16 }
  0x7c   : > { %1642 = vmatmul.msk.bf16.vlgmr.msrb.gmra.mxu0 %vm1157_vm7, %v1437_v7  ;;  %577 = vst.msk [vmem:[#allocation2 + $0x70] sm:$0xf] %vm571_vm8, %v558_v13  ;;  %v700_v7 = vrot.slane %v698_v55, 4  ;;  %v303_v12 = vrot.slane %v301_v3, 5 }
  0x7d   : > { %v686_v27 = vrot.slane %v684_v22, 4  ;;  %v721_v22 = vshll.u32 %v1417_v6, 16  ;;  %v714_v26 = vrot.slane %v712_v17, 4 }
  0x7e   : > { %v704_v15 = vor.u32 %v703_v8, %v700_v7  ;;  %v304_v29 = vsel %vm1873_vm5, %v299_v21, %v303_v12 }
  0x7f   : > { %v690_v32 = vor.u32 %v689_v28, %v686_v27  ;;  %v1476_v9 = vld [vmem:[#allocation2 + $0x60] sm:$0xf]  ;;  %334 = vst.msk [vmem:[#allocation2 + $0x84] sm:$0xf] %vm327_vm6, %v304_v29 }
  0x81   : > { %v691_v36 = vrot.slane %v690_v32, 4  ;;  %v723_v32 = vrot.slane %v721_v22, 5 }
  0x83   : > { %v696_v43 = vsel %vm1873_vm5, %v691_v36, %v695_v38  ;;  %v1470_v42 = vld [vmem:[#allocation2 + $0x6c] sm:$0xf0] }
  0x84   : > { %738 = vst.msk [vmem:[#allocation2 + $0x74] sm:$0xf] %vm327_vm6, %v696_v43 }
  0x85   : > { %v548_v18 = vpop.permute.xlu0 %547 }
  0x86   : > { %572 = vst.msk [vmem:[#allocation2 + $0xc] sm:$0xf] %vm571_vm8, %v548_v18  ;;  %v715_v18 = vshll.u32 %v1416_v4, 16 }
  0x87   : > { %v552_v24 = vpop.permute.xlu1 %551 }
  0x88   : > { %574 = vst.msk [vmem:[#allocation2 + $0x34] sm:$0xf] %vm571_vm8, %v552_v24  ;;  %v705_v24 = vrot.slane %v704_v15, 4  ;;  %v717_v27 = vrot.slane %v715_v18, 5 }
  0x8a   : > { %v710_v30 = vsel %vm1873_vm5, %v705_v24, %v709_v25  ;;  %v718_v31 = vor.u32 %v717_v27, %v714_v26 }
  0x8b   : > { %v1663_v13 = vld [vmem:[#allocation2 + $0x70] sm:$0xf0]  ;;  %739 = vst.msk [vmem:[#allocation2 + $0x88] sm:$0xf] %vm327_vm6, %v710_v30 }
  0x8c   : > { %1643 = vmatmul.msk.bf16.gmra.mxu0 %vm1157_vm7, %v1457_v45  ;;  %v1477_v28 = vor.u32 %v1663_v13, %v1476_v9  ;;  %v719_v33 = vrot.slane %v718_v31, 4 }
  0x8d   : > { %v550_v39 = vpop.permute.xlu0 %549  ;;  %v1650_v53 = vld [vmem:[#allocation2 + $0xc] sm:$0xf] }
  0x8e   : > { %573 = vst.msk [vmem:[#allocation2 + $0x20] sm:$0xf] %vm571_vm8, %v550_v39  ;;  %v724_v36 = vsel %vm1873_vm5, %v719_v33, %v723_v32 }
  0x8f   : > { %v554_v41 = vpop.permute.xlu1 %553  ;;  %v1655_v34 = vld [vmem:[#allocation2 + $0x34] sm:$0xf]  ;;  %740 = vst.msk [vmem:[#allocation2 + $0x9c] sm:$0xf] %vm327_vm6, %v724_v36 }
  0x90   : > { %575 = vst.msk [vmem:[#allocation2 + $0x48] sm:$0xf] %vm571_vm8, %v554_v41  ;;  %v1660_v41 = vld [vmem:[#allocation2 + $0x5c] sm:$0xf] }
  0x91   : > { %v1473_v43 = vor.u32 %v1660_v41, %v1470_v42 }
  0x92   : > { %v1496_v38 = vld [vmem:[#allocation2 + $0x88] sm:$0xf] }
  0x95   : > { %v1430_v54 = vld [vmem:[#allocation2 + $0x1c] sm:$0xf0]  ;;  %v560_v23 = vpop.permute.xlu0 %559 }
  0x96   : > { %v1433_v57 = vor.u32 %v1650_v53, %v1430_v54  ;;  %578 = vst.msk [vmem:[#allocation2 + $0x84] sm:$0xf] %vm571_vm8, %v560_v23  ;;  %v1668_v39 = vld [vmem:[#allocation2 + $0x98] sm:$0xf0] }
  0x97   : > { %v562_v14 = vpop.permute.xlu1 %561  ;;  %v1450_v35 = vld [vmem:[#allocation2 + $0x44] sm:$0xf0]  ;;  %v1497_v40 = vor.u32 %v1668_v39, %v1496_v38 }
  0x98   : > { %1265 = vmatmul.bf16.vlgmr.msra.gmra.mxu3 %v1433_v57  ;;  %579 = vst.msk [vmem:[#allocation2 + $0x98] sm:$0xf] %vm571_vm8, %v562_v14  ;;  %v1453_v37 = vor.u32 %v1655_v34, %v1450_v35 }
  0x9c   : > { %1644 = vmatmul.msk.bf16.gmra.mxu0 %vm1157_vm7, %v1477_v28 }
  0x9d   : > { %v1665_v44 = vld [vmem:[#allocation2 + $0x84] sm:$0xf] }
  0x9f   : > { %v1490_v45 = vld [vmem:[#allocation2 + $0x94] sm:$0xf0] }
  0xa0   : > { %v1493_v46 = vor.u32 %v1665_v44, %v1490_v45 }
  0xa8   : > { %1270 = vmatmul.bf16.gmra.mxu3 %v1453_v37  ;;  %v1184_v47 = vpop.f32.mrf.mxu1 }
  0xa9   : > { %v1185_v8 = vadd.f32 %v2082_v58, %v1184_v47 }
  0xac   : > { %1645 = vmatmul.msk.bf16.gmra.mxu0 %vm1157_vm7, %v1497_v40 }
  0xae   : > { %v2075_v49 = vpop.f32.mrf.mxu2 }
  0xb0   : > { %v1186_v20 = vpop.f32.mrf.mxu1 }
  0xb1   : > { %v1187_v16 = vadd.f32 %v2082_v58, %v1186_v20 }
  0xb6   : > { %v2077_v52 = vpop.f32.mrf.mxu2 }
  0xb8   : > { %1275 = vmatmul.bf16.gmra.mxu3 %v1473_v43  ;;  %v1189_v48 = vpop.f32.mrf.mxu1  ;;  %v1195_v43 = vadd.f32 %v2082_v58, %v2075_v49 }
  0xb9   : > { %v1190_v26 = vadd.f32 %v2082_v58, %v1189_v48 }
  0xc0   : > { %v1191_v50 = vpop.f32.mrf.mxu1 }
  0xc1   : > { %v1192_v34 = vadd.f32 %v2082_v58, %v1191_v50  ;;  %v1197_v50 = vadd.f32 %v2082_v58, %v2077_v52 }
  0xc8   : > { %1280 = vmatmul.bf16.gmra.mxu3 %v1493_v46  ;;  %v1208_v53 = vpop.f32.mrf.mxu1 }
  0xce   : > { %v1237_v55 = vpop.f32.mrf.mxu2 }
  0xd0   : > { %v1210_v56 = vpop.f32.mrf.mxu1 }
  0xd3   : > { %v1179_v51 = vpop.f32.mrf.mxu0 }
  0xd4   : > { %v1180_v59 = vadd.f32 %v2082_v58, %v1179_v51 }
  0xd6   : > { %v1239_v60 = vpop.f32.mrf.mxu2  ;;  %v1209_v61 = vadd.f32 %v1208_v53, %v1180_v59 }
  0xd8   : > { %v1213_v62 = vpop.f32.mrf.mxu1  ;;  %v1238_v1 = vadd.f32 %v1237_v55, %v1209_v61 }
  0xd9   : > { %v1214_v13 = vadd.f32 %v1213_v62, %v1185_v8 }
  0xdb   : > { %v1181_v54 = vpop.f32.mrf.mxu0 }
  0xdc   : > { %v1182_v0 = vadd.f32 %v2082_v58, %v1181_v54 }
  0xde   : > { %v1242_v5 = vpop.f32.mrf.mxu2  ;;  %v1211_v6 = vadd.f32 %v1210_v56, %v1182_v0 }
  0xdf   : > { %v1243_v17 = vadd.f32 %v1242_v5, %v1214_v13 }
  0xe0   : > { %v1215_v9 = vpop.f32.mrf.mxu1  ;;  %v1240_v10 = vadd.f32 %v1239_v60, %v1211_v6 }
  0xe1   : > { %v1216_v23 = vadd.f32 %v1215_v9, %v1187_v16 }
  0xe6   : > { %v1244_v15 = vpop.f32.mrf.mxu2 }
  0xe7   : > { %v1245_v27 = vadd.f32 %v1244_v15, %v1216_v23 }
  0xe8   : > { %v1218_v19 = vpop.f32.mrf.mxu1 }
  0xe9   : > { %v1219_v30 = vadd.f32 %v1218_v19, %v1190_v26 }
  0xee   : > { %v1247_v25 = vpop.f32.mrf.mxu2 }
  0xef   : > { %v1248_v35 = vadd.f32 %v1247_v25, %v1219_v30 }
  0xf0   : > { %v1220_v31 = vpop.f32.mrf.mxu1 }
  0xf1   : > { %v1221_v39 = vadd.f32 %v1220_v31, %v1192_v34 }
  0xf6   : > { %v1249_v36 = vpop.f32.mrf.mxu2 }
  0xf7   : > { %v1250_v44 = vadd.f32 %v1249_v36, %v1221_v39 }
  0xf8   : > { %v1223_v41 = vpop.f32.mrf.mxu1 }
  0xf9   : > { %v1295_v57 = vpop.f32.mrf.mxu0  ;;  %v1224_v20 = vadd.f32 %v1223_v41, %v1195_v43 }
  0xfe   : > { %v1252_v47 = vpop.f32.mrf.mxu2 }
  0xff   : > { %v1253_v51 = vadd.f32 %v1252_v47, %v1224_v20 }
 0x100   : > { %v1225_v53 = vpop.f32.mrf.mxu1 }
 0x101   : > { %v1297_v63 = vpop.f32.mrf.mxu0 }
 0x106   : > { %v1254_v49 = vpop.f32.mrf.mxu2 }
 0x109   : > { %v1300_v11 = vpop.f32.mrf.mxu0 }
 0x111   : > { %v1302_v22 = vpop.f32.mrf.mxu0 }
 0x119   : > { %v1305_v33 = vpop.f32.mrf.mxu0 }
 0x11b   : > { %v1266_v3 = vpop.f32.mrf.mxu3 }
 0x11c   : > { %v1267_v4 = vadd.f32 %v1266_v3, %v1238_v1 }
 0x11e   : > { %v1296_v7 = vadd.f32 %v1295_v57, %v1267_v4  ;;  %v1226_v57 = vadd.f32 %v1225_v53, %v1197_v50 }
 0x120   : > { %1315 = vst [vmem:[%s2090_s23] sm:$0xff] %v1296_v7  ;;  %v1255_v60 = vadd.f32 %v1254_v49, %v1226_v57 }
 0x121   : > { %v1307_v42 = vpop.f32.mrf.mxu0 }
 0x123   : > { %v1268_v2 = vpop.f32.mrf.mxu3 }
 0x124   : > { %v1269_v12 = vadd.f32 %v1268_v2, %v1240_v10 }
 0x126   : > { %v1298_v14 = vadd.f32 %v1297_v63, %v1269_v12 }
 0x128   : > { %1316 = vst [vmem:[%s2090_s23 + $0x8] sm:$0xff] %v1298_v14 }
 0x129   : > { %v1310_v54 = vpop.f32.mrf.mxu0 }
 0x12b   : > { %v1271_v18 = vpop.f32.mrf.mxu3 }
 0x12c   : > { %v1272_v21 = vadd.f32 %v1271_v18, %v1243_v17 }
 0x12e   : > { %v1301_v24 = vadd.f32 %v1300_v11, %v1272_v21 }
 0x130   : > { %1317 = vst [vmem:[%s2090_s23 + $0x10] sm:$0xff] %v1301_v24 }
 0x131   : > { %v1312_v63 = vpop.f32.mrf.mxu0 }
 0x133   : > { %v1273_v28 = vpop.f32.mrf.mxu3 }
 0x134   : > { %v1274_v29 = vadd.f32 %v1273_v28, %v1245_v27 }
 0x136   : > { %v1303_v32 = vadd.f32 %v1302_v22, %v1274_v29 }
 0x138   : > { %1318 = vst [vmem:[%s2090_s23 + $0x18] sm:$0xff] %v1303_v32 }
 0x13b   : > { %v1276_v37 = vpop.f32.mrf.mxu3 }
 0x13c   : > { %v1277_v38 = vadd.f32 %v1276_v37, %v1248_v35 }
 0x13e   : > { %v1306_v40 = vadd.f32 %v1305_v33, %v1277_v38 }
 0x140   : > { %1319 = vst [vmem:[%s2090_s23 + $0x20] sm:$0xff] %v1306_v40 }
 0x143   : > { %v1278_v45 = vpop.f32.mrf.mxu3 }
 0x144   : > { %v1279_v46 = vadd.f32 %v1278_v45, %v1250_v44 }
 0x146   : > { %v1308_v48 = vadd.f32 %v1307_v42, %v1279_v46 }
 0x148   : > { %1320 = vst [vmem:[%s2090_s23 + $0x28] sm:$0xff] %v1308_v48 }
 0x14b   : > { %v1281_v55 = vpop.f32.mrf.mxu3 }
 0x14c   : > { %v1282_v56 = vadd.f32 %v1281_v55, %v1253_v51 }
 0x14e   : > { %v1311_v59 = vadd.f32 %v1310_v54, %v1282_v56 }
 0x150   : > { %1321 = vst [vmem:[%s2090_s23 + $0x30] sm:$0xff] %v1311_v59 }
 0x153   : > { %v1283_v61 = vpop.f32.mrf.mxu3 }
 0x154   : > { %v1284_v62 = vadd.f32 %v1283_v61, %v1255_v60 }
 0x156   : > { %v1313_v0 = vadd.f32 %v1312_v63, %v1284_v62 }
 0x158   : > { %1322 = vst [vmem:[%s2090_s23 + $0x38] sm:$0xff] %v1313_v0 }
 0x159 PF: > { %s13_s12 = sadd.s32 1, %s1738_s12  }
 0x15a   : > { %p10_p4 = scmp.ge.s32.totalorder %s13_s12, 4  }
 0x15c   :  { %12 = sbr.rel (!%p10_p4) target bundleno = 1 (0x1), region = 63 }

</bundles_post_ra>
